<compile_context>
chip_gen: v7x
topology: tpu7x:2x2x1
jax: 0.10.0
libtpu: 0.0.40
codegen_flags: <defaults>
</compile_context>

<pallas_src>
import functools

import numpy as np
import jax
import jax.numpy as jnp
from jax.experimental import pallas as pl
from jax.experimental.pallas import tpu as pltpu


def _kfill_kernel(k_ref, m_ref, o_ref, *, frame_dist, divide_by_n, clipped):
    nc = k_ref.shape[0]          # 2 (real/imag)
    mc = m_ref.shape[0]          # 1 (shared mask) or 2
    nt = k_ref.shape[1]

    # (NT, 1) row index, hoisted once per tile.  All boundary-validity masks
    # for the clipped shifts and the clipped neighbour counts are built from
    # this single column iota (no full-tile iota / min / max passes).
    row = jax.lax.broadcasted_iota(jnp.int32, (nt, 1), 0)

    def pair_sum(x, dt):
        """x[t+dt] + x[t-dt] with zero ('clipped') or circular boundary.

        Uses pltpu.roll (XLU slot) instead of slice+zeros+concat, so no
        full-tile VMEM concat temporaries are materialized.
        """
        if clipped:
            if dt >= nt:
                return jnp.zeros_like(x)
            fwd = jnp.where(row < nt - dt,
                            pltpu.roll(x, shift=nt - dt, axis=0), 0.0)
            bwd = jnp.where(row >= dt,
                            pltpu.roll(x, shift=dt, axis=0), 0.0)
            return fwd + bwd
        # Circular wrap.  NOTE: if 2*max(frame_dist)+1 > NT this wraps more
        # than once and diverges from PyTorch's single concat-pad (PyTorch
        # itself assumes max(frame_dist) <= NT).
        a, b = dt % nt, (-dt) % nt
        ra = x if a == 0 else pltpu.roll(x, shift=a, axis=0)
        rb = x if b == 0 else pltpu.roll(x, shift=b, axis=0)
        return ra + rb

    # Load every channel / mask slab exactly once; everything below reuses
    # these values (keeps the set of live full-tile slabs small and fixed).
    k = [k_ref[c] for c in range(nc)]
    m = [m_ref[c] for c in range(mc)]

    # Data-consistency pre-products, shared across all frame_dist levels:
    #   out = (1 - m) * val + m * k
    one_minus_m = [1.0 - m[c] for c in range(mc)]
    mk = [m[c if mc == nc else 0] * k[c] for c in range(nc)]

    acc_num = list(k)
    acc_den = list(m) if not divide_by_n else None

    # Process frame distances in ascending order so the box sums are grown
    # incrementally; each result is written to its original output slot.
    order = sorted(range(len(frame_dist)), key=lambda i: frame_dist[i])
    prev = 0
    for idx in order:
        n = frame_dist[idx]
        for dt in range(prev + 1, n + 1):
            for c in range(nc):
                acc_num[c] = acc_num[c] + pair_sum(k[c], dt)
            if not divide_by_n:
                for c in range(mc):
                    acc_den[c] = acc_den[c] + pair_sum(m[c], dt)
        prev = max(prev, n)

        if divide_by_n:
            if clipped:
                # Neighbour count as an (NT, 1) column, broadcast into the tile.
                cnt = (jnp.minimum(row + n, nt - 1)
                       - jnp.maximum(row - n, 0) + 1)
                inv = 1.0 / cnt.astype(jnp.float32)
            else:
                inv = jnp.float32(1.0 / (2 * n + 1))
            inv_den = [inv] * mc
        else:
            # Mask-count denominator with clamp(min=1); computed once and
            # shared across both channels when the mask has a single channel.
            inv_den = [pl.reciprocal(jnp.maximum(acc_den[c], 1.0), approx=False)
                       for c in range(mc)]

        for c in range(nc):
            mm = c if mc == nc else 0
            val = acc_num[c] * inv_den[mm]
            o_ref[idx, c] = (one_minus_m[mm] * val + mk[c]).astype(o_ref.dtype)


def _choose_spatial_tile(s, nt, nd, mc, budget_bytes):
    """Largest multiple-of-128 lane tile whose working set fits the budget."""
    nc = 2
    # Double-buffered pipeline blocks (k, mask, out) + live in-kernel slabs
    # (k, m, acc_num, acc_den, 1-m, m*k, a few temporaries), all f32.
    live_slabs = 3 * nc + 3 * mc + 4
    bytes_per_lane = 4 * nt * (2 * (nc + mc + nd * nc) + live_slabs)
    max_ts = max(128, (budget_bytes // bytes_per_lane) // 128 * 128)
    ts = min(max_ts, ((s + 127) // 128) * 128)
    return max(128, (ts // 128) * 128)


def kspace_fill_neighbour(k, mask, frame_dist=(0, 1, 2), divide_by_n=False,
                          clipped=True, out_dtype=None, vmem_limit_bytes=None):
    """k: (n, 2, NT, nx, ny); mask: (n, 1 or 2, NT, nx, ny) float32.

    Returns (n, len(frame_dist), 2, NT, nx, ny) directly in its final layout.
    """
    frame_dist = tuple(int(d) for d in frame_dist)
    if 0 not in frame_dist:
        raise ValueError("There suppose to be a 0 in fr_d!")
    nb, nc, nt, nx, ny = k.shape
    assert nc == 2, "channel dim must be 2 (real/imag)"
    mb, mc, mt, mx, my = mask.shape
    assert (mb, mt, mx, my) == (nb, nt, nx, ny) and mc in (1, nc)
    nd = len(frame_dist)
    out_dtype = k.dtype if out_dtype is None else jnp.dtype(out_dtype)

    # Generation-aware VMEM budget: ~60% of physical VMEM, capped at 64 MiB
    # (v5e/v6e: 128 MiB physical -> 64 MiB limit; v7x: 64 MiB -> ~38 MiB).
    if vmem_limit_bytes is None:
        try:
            vmem_cap = int(pltpu.get_tpu_info().vmem_capacity_bytes)
        except Exception:  # pragma: no cover - conservative fallback
            vmem_cap = 128 * 1024 * 1024
        vmem_limit_bytes = int(min(max(vmem_cap * 0.6, 32 * 2**20), 64 * 2**20))
    budget = vmem_limit_bytes // 2

    s = nx * ny
    ts = _choose_spatial_tile(s, nt, nd, mc, budget)
    # Megacore / pipeline friendliness: keep >= 8 grid steps (when possible)
    # so both v7x TensorCores get work and DMA has steps to hide behind.
    while nb * pl.cdiv(s, ts) < 8 and ts > 128:
        ts = max(128, (ts // 2) // 128 * 128)
    n_st = pl.cdiv(s, ts)
    s_pad = n_st * ts       # pad S up to a multiple of ts (no TS=128 fallback)

    k2 = k.reshape(nb, nc, nt, s)
    m2 = mask.reshape(nb, mc, nt, s)
    if s_pad != s:
        pad = ((0, 0), (0, 0), (0, 0), (0, s_pad - s))
        k2 = jnp.pad(k2, pad)
        m2 = jnp.pad(m2, pad)

    # Both channels are folded into one grid step so the (single-channel) mask
    # work is done once per tile; mask block is fetched once per grid step.
    k_spec = pl.BlockSpec((None, nc, nt, ts), lambda b, st: (b, 0, 0, st))
    m_spec = pl.BlockSpec((None, mc, nt, ts), lambda b, st: (b, 0, 0, st))
    # Output written directly in the final (nb, nd, nc, nt, s) layout.
    o_spec = pl.BlockSpec((None, nd, nc, nt, ts),
                          lambda b, st: (b, 0, 0, 0, st))

    kernel = functools.partial(_kfill_kernel, frame_dist=frame_dist,
                               divide_by_n=divide_by_n, clipped=clipped)

    out = pl.pallas_call(
        kernel,
        out_shape=jax.ShapeDtypeStruct((nb, nd, nc, nt, s_pad), out_dtype),
        grid_spec=pltpu.PrefetchScalarGridSpec(
            num_scalar_prefetch=0,
            grid=(nb, n_st),
            in_specs=[k_spec, m_spec],
            out_specs=o_spec,
        ),
        compiler_params=pltpu.CompilerParams(
            dimension_semantics=("parallel", "parallel"),
            vmem_limit_bytes=int(vmem_limit_bytes),
        ),
    )(k2, m2)

    if s_pad != s:
        out = out[..., :s]
    return out.reshape(nb, nd, nc, nt, nx, ny)


def _reference(k, mask, frame_dist, divide_by_n, clipped):
    """Pure-JAX reference mirroring the PyTorch forward."""
    nb, nc, nt, nx, ny = k.shape
    max_d = max(frame_dist)
    pad = ((0, 0), (0, 0), (max_d, max_d), (0, 0), (0, 0))
    if clipped:
        kp = jnp.pad(k, pad)
        mp = jnp.pad(mask, pad)
        op = jnp.pad(jnp.ones_like(mask), pad)
    else:
        kp = jnp.concatenate([k[:, :, -max_d:], k, k[:, :, :max_d]], axis=2)
        mp = jnp.concatenate([mask[:, :, -max_d:], mask, mask[:, :, :max_d]], axis=2)
        op = jnp.ones_like(mp)
    outs = []
    for n in frame_dist:
        num = sum(kp[:, :, max_d + dt: max_d + dt + nt] for dt in range(-n, n + 1))
        src = op if divide_by_n else mp
        den = sum(src[:, :, max_d + dt: max_d + dt + nt] for dt in range(-n, n + 1))
        den = jnp.maximum(den, 1.0)
        val = num / den
        outs.append((1.0 - mask) * val + mask * k)
    return jnp.stack(outs, axis=1)  # (nb, nd, 2, nt, nx, ny)


if __name__ == "__main__":
    key = jax.random.PRNGKey(0)
    kk, km = jax.random.split(key)

    nb, nc, nt, nx, ny = 2, 2, 8, 16, 16
    frame_dist = (0, 1, 2)

    k = jax.random.normal(kk, (nb, nc, nt, nx, ny), dtype=jnp.float32)
    # Binary sampling mask shared across real/imag (channel dim 1); the wrapper
    # never materializes a broadcast copy of it.
    mask = (jax.random.uniform(km, (nb, 1, nt, nx, ny)) < 0.33).astype(jnp.float32)
    mask_full = jnp.broadcast_to(mask, (nb, nc, nt, nx, ny))

    for divide_by_n in (False, True):
        for clipped in (True, False):
            out = kspace_fill_neighbour(k, mask, frame_dist=frame_dist,
                                        divide_by_n=divide_by_n, clipped=clipped)
            out = jax.block_until_ready(out)
            assert out.shape == (nb, len(frame_dist), nc, nt, nx, ny)
            ref = _reference(k, mask_full, frame_dist,
                             divide_by_n=divide_by_n, clipped=clipped)
            np.testing.assert_allclose(np.asarray(out), np.asarray(ref),
                                       rtol=1e-5, atol=1e-5)

    print("KERNEL_OK")
</pallas_src>

<mosaic_0001>
module attributes {stable_mosaic.version = 11 : i64} {
  func.func @_kfill_kernel(%arg0: i32, %arg1: i32, %arg2: memref<1x2x8x128xf32, #tpu.memory_space<vmem>>, %arg3: memref<1x1x8x128xf32, #tpu.memory_space<vmem>>, %arg4: memref<1x3x2x8x128xf32, #tpu.memory_space<vmem>>) attributes {dimension_semantics = [#tpu.dimension_semantics<parallel>, #tpu.dimension_semantics<parallel>], iteration_bounds = array<i64: 2, 2>, scalar_prefetch = 0 : i64, scratch_operands = 0 : i64, tpu.core_type = #tpu.core_type<tc>, window_params = [{transform_indices = @transform_0, window_bounds = array<i64: 1, 2, 8, 128>}, {transform_indices = @transform_1, window_bounds = array<i64: 1, 1, 8, 128>}, {transform_indices = @transform_2, window_bounds = array<i64: 1, 3, 2, 8, 128>}]} {
    %0 = tpu.iota {dimensions = array<i32: 0>} : vector<8x1xi32>
    %c0 = arith.constant 0 : index
    %c0_0 = arith.constant 0 : index
    %c0_1 = arith.constant 0 : index
    %c0_2 = arith.constant 0 : index
    %1 = vector.load %arg2[%c0, %c0_0, %c0_1, %c0_2] : memref<1x2x8x128xf32, #tpu.memory_space<vmem>>, vector<1x1x8x128xf32>
    %2 = vector.shape_cast %1 : vector<1x1x8x128xf32> to vector<8x128xf32>
    %c0_3 = arith.constant 0 : index
    %c1 = arith.constant 1 : index
    %c0_4 = arith.constant 0 : index
    %c0_5 = arith.constant 0 : index
    %3 = vector.load %arg2[%c0_3, %c1, %c0_4, %c0_5] : memref<1x2x8x128xf32, #tpu.memory_space<vmem>>, vector<1x1x8x128xf32>
    %4 = vector.shape_cast %3 : vector<1x1x8x128xf32> to vector<8x128xf32>
    %c0_6 = arith.constant 0 : index
    %c0_7 = arith.constant 0 : index
    %c0_8 = arith.constant 0 : index
    %c0_9 = arith.constant 0 : index
    %5 = vector.load %arg3[%c0_6, %c0_7, %c0_8, %c0_9] : memref<1x1x8x128xf32, #tpu.memory_space<vmem>>, vector<1x1x8x128xf32>
    %6 = vector.shape_cast %5 : vector<1x1x8x128xf32> to vector<8x128xf32>
    %cst = arith.constant 1.000000e+00 : f32
    %7 = vector.broadcast %cst : f32 to vector<8x128xf32>
    %8 = arith.subf %7, %6 : vector<8x128xf32>
    %9 = arith.mulf %6, %2 : vector<8x128xf32>
    %10 = arith.mulf %6, %4 : vector<8x128xf32>
    %cst_10 = arith.constant 1.000000e+00 : f32
    %11 = vector.broadcast %cst_10 : f32 to vector<8x128xf32>
    %12 = arith.maximumf %6, %11 : vector<8x128xf32>
    %13 = tpu.reciprocal %12 : vector<8x128xf32> -> vector<8x128xf32>
    %14 = arith.mulf %2, %13 : vector<8x128xf32>
    %15 = arith.mulf %8, %14 : vector<8x128xf32>
    %16 = arith.addf %15, %9 : vector<8x128xf32>
    %c0_11 = arith.constant 0 : index
    %c0_12 = arith.constant 0 : index
    %c0_13 = arith.constant 0 : index
    %c0_14 = arith.constant 0 : index
    %c0_15 = arith.constant 0 : index
    %17 = vector.load %arg4[%c0_11, %c0_12, %c0_13, %c0_14, %c0_15] : memref<1x3x2x8x128xf32, #tpu.memory_space<vmem>>, vector<1x1x1x8x128xf32>
    %18 = vector.shape_cast %17 : vector<1x1x1x8x128xf32> to vector<8x128xf32>
    %19 = vector.shape_cast %16 : vector<8x128xf32> to vector<1x1x1x8x128xf32>
    tpu.vector_store %arg4[%c0_11, %c0_12, %c0_13, %c0_14, %c0_15], %19 {strides = array<i32>} : memref<1x3x2x8x128xf32, #tpu.memory_space<vmem>>, vector<1x1x1x8x128xf32>,
    %20 = arith.mulf %4, %13 : vector<8x128xf32>
    %21 = arith.mulf %8, %20 : vector<8x128xf32>
    %22 = arith.addf %21, %10 : vector<8x128xf32>
    %c0_16 = arith.constant 0 : index
    %c0_17 = arith.constant 0 : index
    %c1_18 = arith.constant 1 : index
    %c0_19 = arith.constant 0 : index
    %c0_20 = arith.constant 0 : index
    %23 = vector.load %arg4[%c0_16, %c0_17, %c1_18, %c0_19, %c0_20] : memref<1x3x2x8x128xf32, #tpu.memory_space<vmem>>, vector<1x1x1x8x128xf32>
    %24 = vector.shape_cast %23 : vector<1x1x1x8x128xf32> to vector<8x128xf32>
    %25 = vector.shape_cast %22 : vector<8x128xf32> to vector<1x1x1x8x128xf32>
    tpu.vector_store %arg4[%c0_16, %c0_17, %c1_18, %c0_19, %c0_20], %25 {strides = array<i32>} : memref<1x3x2x8x128xf32, #tpu.memory_space<vmem>>, vector<1x1x1x8x128xf32>,
    %c7_i32 = arith.constant 7 : i32
    %26 = vector.broadcast %c7_i32 : i32 to vector<8x1xi32>
    %27 = arith.cmpi slt, %0, %26 : vector<8x1xi32>
    %c7_i32_21 = arith.constant 7 : i32
    %28 = tpu.dynamic_rotate %2 by %c7_i32_21 dim 0 : vector<8x128xf32>, i32 -> vector<8x128xf32>
    %cst_22 = arith.constant 0.000000e+00 : f32
    %29 = vector.shape_cast %27 : vector<8x1xi1> to vector<8x1xi1>
    %30 = vector.broadcast %29 : vector<8x1xi1> to vector<8x128xi1>
    %31 = vector.broadcast %cst_22 : f32 to vector<8x128xf32>
    %32 = arith.select %30, %28, %31 : vector<8x128xi1>, vector<8x128xf32>
    %c1_i32 = arith.constant 1 : i32
    %33 = vector.broadcast %c1_i32 : i32 to vector<8x1xi32>
    %34 = arith.cmpi sge, %0, %33 : vector<8x1xi32>
    %c1_i32_23 = arith.constant 1 : i32
    %35 = tpu.dynamic_rotate %2 by %c1_i32_23 dim 0 : vector<8x128xf32>, i32 -> vector<8x128xf32>
    %cst_24 = arith.constant 0.000000e+00 : f32
    %36 = vector.shape_cast %34 : vector<8x1xi1> to vector<8x1xi1>
    %37 = vector.broadcast %36 : vector<8x1xi1> to vector<8x128xi1>
    %38 = vector.broadcast %cst_24 : f32 to vector<8x128xf32>
    %39 = arith.select %37, %35, %38 : vector<8x128xi1>, vector<8x128xf32>
    %40 = arith.addf %32, %39 : vector<8x128xf32>
    %41 = arith.addf %2, %40 : vector<8x128xf32>
    %c7_i32_25 = arith.constant 7 : i32
    %42 = vector.broadcast %c7_i32_25 : i32 to vector<8x1xi32>
    %43 = arith.cmpi slt, %0, %42 : vector<8x1xi32>
    %c7_i32_26 = arith.constant 7 : i32
    %44 = tpu.dynamic_rotate %4 by %c7_i32_26 dim 0 : vector<8x128xf32>, i32 -> vector<8x128xf32>
    %cst_27 = arith.constant 0.000000e+00 : f32
    %45 = vector.shape_cast %43 : vector<8x1xi1> to vector<8x1xi1>
    %46 = vector.broadcast %45 : vector<8x1xi1> to vector<8x128xi1>
    %47 = vector.broadcast %cst_27 : f32 to vector<8x128xf32>
    %48 = arith.select %46, %44, %47 : vector<8x128xi1>, vector<8x128xf32>
    %c1_i32_28 = arith.constant 1 : i32
    %49 = vector.broadcast %c1_i32_28 : i32 to vector<8x1xi32>
    %50 = arith.cmpi sge, %0, %49 : vector<8x1xi32>
    %c1_i32_29 = arith.constant 1 : i32
    %51 = tpu.dynamic_rotate %4 by %c1_i32_29 dim 0 : vector<8x128xf32>, i32 -> vector<8x128xf32>
    %cst_30 = arith.constant 0.000000e+00 : f32
    %52 = vector.shape_cast %50 : vector<8x1xi1> to vector<8x1xi1>
    %53 = vector.broadcast %52 : vector<8x1xi1> to vector<8x128xi1>
    %54 = vector.broadcast %cst_30 : f32 to vector<8x128xf32>
    %55 = arith.select %53, %51, %54 : vector<8x128xi1>, vector<8x128xf32>
    %56 = arith.addf %48, %55 : vector<8x128xf32>
    %57 = arith.addf %4, %56 : vector<8x128xf32>
    %c7_i32_31 = arith.constant 7 : i32
    %58 = vector.broadcast %c7_i32_31 : i32 to vector<8x1xi32>
    %59 = arith.cmpi slt, %0, %58 : vector<8x1xi32>
    %c7_i32_32 = arith.constant 7 : i32
    %60 = tpu.dynamic_rotate %6 by %c7_i32_32 dim 0 : vector<8x128xf32>, i32 -> vector<8x128xf32>
    %cst_33 = arith.constant 0.000000e+00 : f32
    %61 = vector.shape_cast %59 : vector<8x1xi1> to vector<8x1xi1>
    %62 = vector.broadcast %61 : vector<8x1xi1> to vector<8x128xi1>
    %63 = vector.broadcast %cst_33 : f32 to vector<8x128xf32>
    %64 = arith.select %62, %60, %63 : vector<8x128xi1>, vector<8x128xf32>
    %c1_i32_34 = arith.constant 1 : i32
    %65 = vector.broadcast %c1_i32_34 : i32 to vector<8x1xi32>
    %66 = arith.cmpi sge, %0, %65 : vector<8x1xi32>
    %c1_i32_35 = arith.constant 1 : i32
    %67 = tpu.dynamic_rotate %6 by %c1_i32_35 dim 0 : vector<8x128xf32>, i32 -> vector<8x128xf32>
    %cst_36 = arith.constant 0.000000e+00 : f32
    %68 = vector.shape_cast %66 : vector<8x1xi1> to vector<8x1xi1>
    %69 = vector.broadcast %68 : vector<8x1xi1> to vector<8x128xi1>
    %70 = vector.broadcast %cst_36 : f32 to vector<8x128xf32>
    %71 = arith.select %69, %67, %70 : vector<8x128xi1>, vector<8x128xf32>
    %72 = arith.addf %64, %71 : vector<8x128xf32>
    %73 = arith.addf %6, %72 : vector<8x128xf32>
    %cst_37 = arith.constant 1.000000e+00 : f32
    %74 = vector.broadcast %cst_37 : f32 to vector<8x128xf32>
    %75 = arith.maximumf %73, %74 : vector<8x128xf32>
    %76 = tpu.reciprocal %75 : vector<8x128xf32> -> vector<8x128xf32>
    %77 = arith.mulf %41, %76 : vector<8x128xf32>
    %78 = arith.mulf %8, %77 : vector<8x128xf32>
    %79 = arith.addf %78, %9 : vector<8x128xf32>
    %c0_38 = arith.constant 0 : index
    %c1_39 = arith.constant 1 : index
    %c0_40 = arith.constant 0 : index
    %c0_41 = arith.constant 0 : index
    %c0_42 = arith.constant 0 : index
    %80 = vector.load %arg4[%c0_38, %c1_39, %c0_40, %c0_41, %c0_42] : memref<1x3x2x8x128xf32, #tpu.memory_space<vmem>>, vector<1x1x1x8x128xf32>
    %81 = vector.shape_cast %80 : vector<1x1x1x8x128xf32> to vector<8x128xf32>
    %82 = vector.shape_cast %79 : vector<8x128xf32> to vector<1x1x1x8x128xf32>
    tpu.vector_store %arg4[%c0_38, %c1_39, %c0_40, %c0_41, %c0_42], %82 {strides = array<i32>} : memref<1x3x2x8x128xf32, #tpu.memory_space<vmem>>, vector<1x1x1x8x128xf32>,
    %83 = arith.mulf %57, %76 : vector<8x128xf32>
    %84 = arith.mulf %8, %83 : vector<8x128xf32>
    %85 = arith.addf %84, %10 : vector<8x128xf32>
    %c0_43 = arith.constant 0 : index
    %c1_44 = arith.constant 1 : index
    %c1_45 = arith.constant 1 : index
    %c0_46 = arith.constant 0 : index
    %c0_47 = arith.constant 0 : index
    %86 = vector.load %arg4[%c0_43, %c1_44, %c1_45, %c0_46, %c0_47] : memref<1x3x2x8x128xf32, #tpu.memory_space<vmem>>, vector<1x1x1x8x128xf32>
    %87 = vector.shape_cast %86 : vector<1x1x1x8x128xf32> to vector<8x128xf32>
    %88 = vector.shape_cast %85 : vector<8x128xf32> to vector<1x1x1x8x128xf32>
    tpu.vector_store %arg4[%c0_43, %c1_44, %c1_45, %c0_46, %c0_47], %88 {strides = array<i32>} : memref<1x3x2x8x128xf32, #tpu.memory_space<vmem>>, vector<1x1x1x8x128xf32>,
    %c6_i32 = arith.constant 6 : i32
    %89 = vector.broadcast %c6_i32 : i32 to vector<8x1xi32>
    %90 = arith.cmpi slt, %0, %89 : vector<8x1xi32>
    %c6_i32_48 = arith.constant 6 : i32
    %91 = tpu.dynamic_rotate %2 by %c6_i32_48 dim 0 : vector<8x128xf32>, i32 -> vector<8x128xf32>
    %cst_49 = arith.constant 0.000000e+00 : f32
    %92 = vector.shape_cast %90 : vector<8x1xi1> to vector<8x1xi1>
    %93 = vector.broadcast %92 : vector<8x1xi1> to vector<8x128xi1>
    %94 = vector.broadcast %cst_49 : f32 to vector<8x128xf32>
    %95 = arith.select %93, %91, %94 : vector<8x128xi1>, vector<8x128xf32>
    %c2_i32 = arith.constant 2 : i32
    %96 = vector.broadcast %c2_i32 : i32 to vector<8x1xi32>
    %97 = arith.cmpi sge, %0, %96 : vector<8x1xi32>
    %c2_i32_50 = arith.constant 2 : i32
    %98 = tpu.dynamic_rotate %2 by %c2_i32_50 dim 0 : vector<8x128xf32>, i32 -> vector<8x128xf32>
    %cst_51 = arith.constant 0.000000e+00 : f32
    %99 = vector.shape_cast %97 : vector<8x1xi1> to vector<8x1xi1>
    %100 = vector.broadcast %99 : vector<8x1xi1> to vector<8x128xi1>
    %101 = vector.broadcast %cst_51 : f32 to vector<8x128xf32>
    %102 = arith.select %100, %98, %101 : vector<8x128xi1>, vector<8x128xf32>
    %103 = arith.addf %95, %102 : vector<8x128xf32>
    %104 = arith.addf %41, %103 : vector<8x128xf32>
    %c6_i32_52 = arith.constant 6 : i32
    %105 = vector.broadcast %c6_i32_52 : i32 to vector<8x1xi32>
    %106 = arith.cmpi slt, %0, %105 : vector<8x1xi32>
    %c6_i32_53 = arith.constant 6 : i32
    %107 = tpu.dynamic_rotate %4 by %c6_i32_53 dim 0 : vector<8x128xf32>, i32 -> vector<8x128xf32>
    %cst_54 = arith.constant 0.000000e+00 : f32
    %108 = vector.shape_cast %106 : vector<8x1xi1> to vector<8x1xi1>
    %109 = vector.broadcast %108 : vector<8x1xi1> to vector<8x128xi1>
    %110 = vector.broadcast %cst_54 : f32 to vector<8x128xf32>
    %111 = arith.select %109, %107, %110 : vector<8x128xi1>, vector<8x128xf32>
    %c2_i32_55 = arith.constant 2 : i32
    %112 = vector.broadcast %c2_i32_55 : i32 to vector<8x1xi32>
    %113 = arith.cmpi sge, %0, %112 : vector<8x1xi32>
    %c2_i32_56 = arith.constant 2 : i32
    %114 = tpu.dynamic_rotate %4 by %c2_i32_56 dim 0 : vector<8x128xf32>, i32 -> vector<8x128xf32>
    %cst_57 = arith.constant 0.000000e+00 : f32
    %115 = vector.shape_cast %113 : vector<8x1xi1> to vector<8x1xi1>
    %116 = vector.broadcast %115 : vector<8x1xi1> to vector<8x128xi1>
    %117 = vector.broadcast %cst_57 : f32 to vector<8x128xf32>
    %118 = arith.select %116, %114, %117 : vector<8x128xi1>, vector<8x128xf32>
    %119 = arith.addf %111, %118 : vector<8x128xf32>
    %120 = arith.addf %57, %119 : vector<8x128xf32>
    %c6_i32_58 = arith.constant 6 : i32
    %121 = vector.broadcast %c6_i32_58 : i32 to vector<8x1xi32>
    %122 = arith.cmpi slt, %0, %121 : vector<8x1xi32>
    %c6_i32_59 = arith.constant 6 : i32
    %123 = tpu.dynamic_rotate %6 by %c6_i32_59 dim 0 : vector<8x128xf32>, i32 -> vector<8x128xf32>
    %cst_60 = arith.constant 0.000000e+00 : f32
    %124 = vector.shape_cast %122 : vector<8x1xi1> to vector<8x1xi1>
    %125 = vector.broadcast %124 : vector<8x1xi1> to vector<8x128xi1>
    %126 = vector.broadcast %cst_60 : f32 to vector<8x128xf32>
    %127 = arith.select %125, %123, %126 : vector<8x128xi1>, vector<8x128xf32>
    %c2_i32_61 = arith.constant 2 : i32
    %128 = vector.broadcast %c2_i32_61 : i32 to vector<8x1xi32>
    %129 = arith.cmpi sge, %0, %128 : vector<8x1xi32>
    %c2_i32_62 = arith.constant 2 : i32
    %130 = tpu.dynamic_rotate %6 by %c2_i32_62 dim 0 : vector<8x128xf32>, i32 -> vector<8x128xf32>
    %cst_63 = arith.constant 0.000000e+00 : f32
    %131 = vector.shape_cast %129 : vector<8x1xi1> to vector<8x1xi1>
    %132 = vector.broadcast %131 : vector<8x1xi1> to vector<8x128xi1>
    %133 = vector.broadcast %cst_63 : f32 to vector<8x128xf32>
    %134 = arith.select %132, %130, %133 : vector<8x128xi1>, vector<8x128xf32>
    %135 = arith.addf %127, %134 : vector<8x128xf32>
    %136 = arith.addf %73, %135 : vector<8x128xf32>
    %cst_64 = arith.constant 1.000000e+00 : f32
    %137 = vector.broadcast %cst_64 : f32 to vector<8x128xf32>
    %138 = arith.maximumf %136, %137 : vector<8x128xf32>
    %139 = tpu.reciprocal %138 : vector<8x128xf32> -> vector<8x128xf32>
    %140 = arith.mulf %104, %139 : vector<8x128xf32>
    %141 = arith.mulf %8, %140 : vector<8x128xf32>
    %142 = arith.addf %141, %9 : vector<8x128xf32>
    %c0_65 = arith.constant 0 : index
    %c2 = arith.constant 2 : index
    %c0_66 = arith.constant 0 : index
    %c0_67 = arith.constant 0 : index
    %c0_68 = arith.constant 0 : index
    %143 = vector.load %arg4[%c0_65, %c2, %c0_66, %c0_67, %c0_68] : memref<1x3x2x8x128xf32, #tpu.memory_space<vmem>>, vector<1x1x1x8x128xf32>
    %144 = vector.shape_cast %143 : vector<1x1x1x8x128xf32> to vector<8x128xf32>
    %145 = vector.shape_cast %142 : vector<8x128xf32> to vector<1x1x1x8x128xf32>
    tpu.vector_store %arg4[%c0_65, %c2, %c0_66, %c0_67, %c0_68], %145 {strides = array<i32>} : memref<1x3x2x8x128xf32, #tpu.memory_space<vmem>>, vector<1x1x1x8x128xf32>,
    %146 = arith.mulf %120, %139 : vector<8x128xf32>
    %147 = arith.mulf %8, %146 : vector<8x128xf32>
    %148 = arith.addf %147, %10 : vector<8x128xf32>
    %c0_69 = arith.constant 0 : index
    %c2_70 = arith.constant 2 : index
    %c1_71 = arith.constant 1 : index
    %c0_72 = arith.constant 0 : index
    %c0_73 = arith.constant 0 : index
    %149 = vector.load %arg4[%c0_69, %c2_70, %c1_71, %c0_72, %c0_73] : memref<1x3x2x8x128xf32, #tpu.memory_space<vmem>>, vector<1x1x1x8x128xf32>
    %150 = vector.shape_cast %149 : vector<1x1x1x8x128xf32> to vector<8x128xf32>
    %151 = vector.shape_cast %148 : vector<8x128xf32> to vector<1x1x1x8x128xf32>
    tpu.vector_store %arg4[%c0_69, %c2_70, %c1_71, %c0_72, %c0_73], %151 {strides = array<i32>} : memref<1x3x2x8x128xf32, #tpu.memory_space<vmem>>, vector<1x1x1x8x128xf32>,
    return
  }
  func.func @transform_0(%arg0: i32, %arg1: i32) -> (i32, i32, i32, i32) {
    %c0_i32 = arith.constant 0 : i32
    %c0_i32_0 = arith.constant 0 : i32
    %c0_i32_1 = arith.constant 0 : i32
    return %arg0, %c0_i32, %c0_i32_0, %arg1 : i32, i32, i32, i32
  }
  func.func @transform_1(%arg0: i32, %arg1: i32) -> (i32, i32, i32, i32) {
    %c0_i32 = arith.constant 0 : i32
    %c0_i32_0 = arith.constant 0 : i32
    %c0_i32_1 = arith.constant 0 : i32
    return %arg0, %c0_i32, %c0_i32_0, %arg1 : i32, i32, i32, i32
  }
  func.func @transform_2(%arg0: i32, %arg1: i32) -> (i32, i32, i32, i32, i32) {
    %c0_i32 = arith.constant 0 : i32
    %c0_i32_0 = arith.constant 0 : i32
    %c0_i32_1 = arith.constant 0 : i32
    %c0_i32_2 = arith.constant 0 : i32
    return %arg0, %c0_i32, %c0_i32_0, %c0_i32_1, %arg1 : i32, i32, i32, i32, i32
  }
}

</mosaic_0001>

<bundles_post_ra>
// kernel: tpu_custom_call.1
= control target key start
LH: loop header
LB: loop body
LE: loop exit
PB: predicated region body
PF: predicated region fallthrough
CT: control target
= control target key end

     0   :  { %s997_s0 = inlined_call_operand.hbm [shape: f32[2,2,8,256], index: 0, kind: input, shape index: {}]   ;;  %s998_s1 = inlined_call_operand.hbm [shape: f32[2,1,8,256], index: 1, kind: input, shape index: {}]   ;;  %s999_s2 = inlined_call_operand.hbm [shape: f32[2,3,2,8,256], index: 2, kind: output, shape index: {}]  }
   0x1   :  { %1005 = sst [smem:[#allocation15_spill]] %s997_s0 }
   0x2   :  { %7 = vsyncpa [#allocation3], 0 }
   0x3   :  { %9 = vsyncpa [#allocation3 + $0x1], 0 }
   0x4   :  { %10 = vsyncpa [#allocation6], 0 }
   0x5   :  { %12 = vsyncpa [#allocation6 + $0x1], 0 }
   0x6   :  { %13 = vsyncpa [#allocation4], 0 }
   0x7   :  { %15 = vsyncpa [#allocation4 + $0x1], 0  ;;  %s747_s9 = smov 0   ;;  %s749_s10 = smov 0  }
   0x8   :  { %s751_s11 = smov 0   ;;  %s753_s12 = smov 0  }
   0x9   :  { %s755_s13 = smov 0   ;;  %s757_s14 = smov 0  }
   0xa   :  { %s759_s15 = smov 0   ;;  %s761_s16 = smov 0  }
   0xb LB: > { %1006 = sst [smem:[#allocation11_spill]] %s701_s11  ;;  %s440_s17 = sadd.s32 4294967295, %s721_s16   ;;  %s721_s16 = sphi %s761_s16, %s21_s16   ;;  %s717_s15 = sphi %s759_s15, %s1029_s15   ;;  %s713_s14 = sphi %s757_s14, %s1028_s14   ;;  %s709_s13 = sphi %s755_s13, %s1027_s13   ;;  %s705_s12 = sphi %s753_s12, %s1026_s12   ;;  %s701_s11 = sphi %s751_s11, %s1021_s11   ;;  %s697_s10 = sphi %s749_s10, %s1025_s10   ;;  %s693_s9 = sphi %s747_s9, %s1024_s9  }
   0xc   : > { %s441_s18 = sadd.s32 4294967294, %s721_s16   ;;  %s30_s19 = sadd.s32 1, %s713_s14 }
   0xd   : > { %s33_s20 = sadd.s32 1, %s717_s15  ;;  %p31_p0 = scmp.ge.s32.totalorder %s30_s19, 2 }
   0xe   : > { %s42_s21 = sadd.s32 1, %s701_s11  ;;  %p49_p1 = scmp.ne.s32.totalorder %s701_s11, %s697_s10 }
   0xf   : > { %p50_p2 = scmp.eq.s32.totalorder %s721_s16, 0  ;;  %s1031_s19 = smov (%p31_p0, %s30_s19), 0 }
  0x10   : > { %1007 = sst [smem:[#allocation12_spill]] %s1031_s19  ;;  %s1033_s20 = smov (!%p31_p0, %s33_s20), %s717_s15 }
  0x11   : > { %s38_s22 = ssub.s32 %s713_s14, %s1031_s19  ;;  %p800_p3 = por %p50_p2, %p49_p1 }
  0x12   : > { %p35_p4 = scmp.ge.s32.totalorder %s1033_s20, 2  ;;  %p55_p5 = scmp.ne.s32.totalorder %s697_s10, %s693_s9 }
  0x13   : > { %p56_p6 = scmp.eq.s32.totalorder %s440_s17, 0  ;;  %p109_p7 = scmp.eq.s32.totalorder %s440_s17, 3 }
  0x14   : > { %s1035_s20 = smov (%p35_p4, %s1033_s20), 0  ;;  %p115_p10 = scmp.eq.s32.totalorder %s441_s18, 3 }
  0x15   : > { %1009 = sst [smem:[#allocation13_spill]] %s1035_s20  ;;  %p808_p8 = por %p56_p6, %p55_p5 }
  0x16   : > { %p812_p9 = por %p109_p7, %p49_p1  ;;  %s37_s26 = ssub.s32 %s717_s15, %s1035_s20 }
  0x17   : > { %s1010_s24 = scalar_select %p808_p8, 1, 0 }
  0x18   : > { %s1011_s25 = scalar_select %p812_p9, 1, 0 }
  0x19   : > { %s39_s27 = sor.u32 %s38_s22, %s37_s26  ;;  %p818_p12 = por %p115_p10, %p55_p5 }
  0x1a   : > { %p40_p11 = scmp.eq.s32.totalorder %s39_s27, 0  ;;  %p481_p13 = scmp.lt.s32.totalorder %s721_s16, 4 }
  0x1b   : > { %s1012_s28 = scalar_select %p818_p12, 1, 0 }
  0x1c   : > { %s824_s29 = sand.u32 1, %s701_s11   ;;  %s445_s4 = sshll.u32 %s717_s15, 2 }
  0x1d   : > { %s827_s30 = scalar_select %p40_p11, %s701_s11, %s42_s21  }
  0x1e   : > { %s444_s3 = sshll.u32 %s824_s29, 4  ;;  %s144_s5 = sadd.s32 %s713_s14, %s445_s4 }
  0x1f   : > { %1013 = sst [smem:[#allocation14_spill]] %s827_s30  ;;  %s139_s6 = scalar_lea.vmem [#allocation2], %s444_s3 }
  0x20   : > { %s147_s7 = sshll.u32 %s139_s6, 4  ;;  %s446_s8 = sshll.u32 %s144_s5, 7  ;;  %s832_s7 = int_to_ptr.vmem [resolvable:$true] %s147_s7 }
  0x21   : > { %s1014_s0 = sld [smem:[#allocation15_spill]]  ;;  %p841_p0 = pnand %p481_p13, %p800_p3 }
  0x22   : > { %s136_s26 = scalar_lea.sflag [#allocation3], %s824_s29 }
  0x23   : > { %p561_p2 = pneg %p841_p0 }
  0x27   : > { %s837_s22 = scalar_lea.hbm %s1014_s0, %s446_s8  ;;  %s564_s4 = scalar_lea.hbm %s1014_s0, 1024 }
  0x28   : > { %s559_s27 = scalar_lea.hbm %s837_s22, 256  ;;  %p565_p3 = scmp.lt.u32.totalorder %s837_s22, %s1014_s0 }
  0x29   : > { %p560_p1 = scmp.ne.s32.totalorder %s837_s22, %s559_s27  ;;  %p566_p6 = scmp.lt.u32.totalorder %s564_s4, %s559_s27 }
  0x2a   : > { %p568_p10 = scmp.lt.u32.totalorder %s559_s27, %s837_s22 }
  0x2b   : > { %p562_p4 = pnand %p561_p2, %p560_p1  ;;  %p567_p7 = por %p566_p6, %p565_p3 }
  0x2d   : > { %p563_p5 = pneg %p562_p4  ;;  %p569_p11 = por %p568_p10, %p567_p7 }
  0x2f   : > { %p570_p13 = pnand %p569_p11, %p563_p5 }
  0x31   : > { %573 = shalt.err (!%p570_p13)
}
  0x32   : > { %s574_s8 = scalar_lea.vmem %s832_s7, 256  ;;  %s723_s17 = smov [#allocation2]  }
  0x33   : > { %p575_p1 = scmp.ne.s32.totalorder %s832_s7, %s574_s8  ;;  %s579_s18 = sshll.u32 %s723_s17, 4  ;;  %s580_s18 = int_to_ptr.vmem [resolvable:$false] %s579_s18 }
  0x34   : > { %s581_s23 = scalar_lea.vmem %s580_s18, 512  ;;  %p582_p9 = scmp.lt.s32.totalorder %s832_s7, %s580_s18 }
  0x35   : > { %p577_p4 = pnand %p575_p1, %p561_p2  ;;  %p583_p3 = scmp.lt.s32.totalorder %s581_s23, %s574_s8 }
  0x37   : > { %p578_p12 = pneg %p577_p4  ;;  %p584_p6 = por %p583_p3, %p582_p9 }
  0x39   : > { %p585_p7 = pnand %p584_p6, %p578_p12 }
  0x3b   : > { %588 = shalt.err (!%p585_p7)
}
  0x3c   : > { %s724_s27 = smov 256   ;;  %s725_s3 = smov 128  }
  0x3d   : > { %s726_s4 = smov 8   ;;  %p450_p9 = scmp.ge.s32.totalorder %s721_s16, 1 }
  0x3e   : > { %473 = dma.hbm_to_vmem [thread:$0]  (!%p841_p0), %s837_s22, 256, %s832_s7, %s136_s26, %s724_s27, %s725_s3, %s726_s4  }
  0x3f   : > { %p175_p12 = scmp.lt.s32.totalorder %s721_s16, 5  ;;  %s447_s5 = sshll.u32 %s824_s29, 3 }
  0x40   : > { %s448_s8 = sshll.u32 %s717_s15, 1  ;;  %s161_s17 = scalar_lea.vmem [#allocation5], %s447_s5 }
  0x41   : > { %p876_p5 = pnand %p450_p9, %p175_p12  ;;  %s170_s18 = sshll.u32 %s161_s17, 4  ;;  %s882_s18 = int_to_ptr.vmem [resolvable:$true] %s170_s18 }
  0x42   : > { %s166_s23 = sadd.s32 %s713_s14, %s448_s8  ;;  %s158_s11 = scalar_lea.sflag [#allocation6], %s824_s29 }
  0x43   : > { %s449_s0 = sshll.u32 %s166_s23, 7  ;;  %s594_s27 = scalar_lea.hbm %s998_s1, 512 }
  0x44   : > { %s168_s30 = scalar_lea.hbm %s998_s1, %s449_s0 }
  0x45   : > { %s589_s7 = scalar_lea.hbm %s168_s30, 128  ;;  %p595_p1 = scmp.lt.u32.totalorder %s168_s30, %s998_s1 }
  0x46   : > { %p590_p10 = scmp.ne.s32.totalorder %s168_s30, %s589_s7  ;;  %p596_p4 = scmp.lt.u32.totalorder %s594_s27, %s589_s7 }
  0x47   : > { %p598_p6 = scmp.lt.u32.totalorder %s589_s7, %s168_s30 }
  0x48   : > { %p592_p11 = pnand %p590_p10, %p561_p2  ;;  %p597_p3 = por %p596_p4, %p595_p1 }
  0x4a   : > { %p593_p13 = pneg %p592_p11  ;;  %p599_p7 = por %p598_p6, %p597_p3 }
  0x4c   : > { %p600_p9 = pnand %p599_p7, %p593_p13 }
  0x4e   : > { %603 = shalt.err (!%p600_p9)
}
  0x4f   : > { %s604_s0 = scalar_lea.vmem %s882_s18, 128  ;;  %s727_s19 = smov [#allocation5]  }
  0x50   : > { %p605_p12 = scmp.ne.s32.totalorder %s882_s18, %s604_s0  ;;  %s609_s20 = sshll.u32 %s727_s19, 4  ;;  %s610_s20 = int_to_ptr.vmem [resolvable:$false] %s609_s20 }
  0x51   : > { %s611_s29 = scalar_lea.vmem %s610_s20, 256  ;;  %p612_p8 = scmp.lt.s32.totalorder %s882_s18, %s610_s20 }
  0x52   : > { %p607_p10 = pnand %p605_p12, %p561_p2  ;;  %p613_p1 = scmp.lt.s32.totalorder %s611_s29, %s604_s0 }
  0x54   : > { %p608_p11 = pneg %p607_p10  ;;  %p614_p4 = por %p613_p1, %p612_p8 }
  0x56   : > { %p615_p3 = pnand %p614_p4, %p608_p11 }
  0x58   : > { %618 = shalt.err (!%p615_p3)
}
  0x59   : > { %476 = dma.hbm_to_vmem [thread:$0]  (!%p841_p0), %s168_s30, 128, %s882_s18, %s158_s11  }
  0x5a   : > { %179 = sbr.rel (%p876_p5) target bundleno = 148 (0x94), region = 28  ;;  %s909_s5 = sand.u32 (!%p876_p5), 1, %s697_s10  }
  0x5b   : > { %s451_s8 = sshll.u32 (!%p876_p5), %s909_s5, 4  ;;  %s182_s17 = scalar_lea.sflag (!%p876_p5), [#allocation3], %s909_s5 }
  0x5c   : > { %s185_s23 = scalar_lea.vmem (!%p876_p5), [#allocation2], %s451_s8  ;;  %p1017_p2 = scmp.ne.s32.totalorder (!%p876_p5), %s1010_s24, 0 }
  0x61   : > { %680 = dma.done.wait (%p1017_p2), %s182_s17, 256  }
  0x62   : > { %682 = vsyncadd (%p1017_p2), %s182_s17, 4294967040  ;;  %s452_s11 = sshll.u32 %s909_s5, 3  ;;  %s191_s30 = scalar_lea.sflag [#allocation6], %s909_s5 }
  0x63   : > { %s194_s21 = scalar_lea.vmem [#allocation5], %s452_s11 }
  0x64   : > { %684 = dma.done.wait (%p1017_p2), %s191_s30, 128  }
  0x65   : > { %686 = vsyncadd (%p1017_p2), %s191_s30, 4294967168  ;;  %v220_v0 = vlaneseq  ;;  %v225_v2 = vld [vmem:[%s194_s21] sm:$0xff]  ;;  %v453_v9 = vld [vmem:[%s185_s23 + $0x8] sm:$0xff]  ;;  %s462_s24 = smul.u32 48, %s909_s5  ;;  %s313_s3 = scalar_lea.sflag [#allocation4], %s909_s5 }
  0x66   : > { %v229_v3 = vmax.f32 %v225_v2, 1.0  ;;  %v258_v4 = vrot.slane %v225_v2, 1  ;;  %v260_v5 = vrot.slane %v225_v2, 7  ;;  %v222_v6 = vld [vmem:[%s185_s23] sm:$0xff]  ;;  %v294_v12 = vrot.slane %v225_v2, 2  ;;  %s463_s18 = smul.u32 12, %s709_s13 }
  0x67   : > { %v221_v1 = vshrl.u32 %v220_v0, 7  ;;  %v241_v11 = vrot.slane %v222_v6, 1  ;;  %v246_v13 = vrot.slane %v222_v6, 7  ;;  %v296_v15 = vrot.slane %v225_v2, 6  ;;  %s219_s6 = scalar_lea.vmem [#allocation7], %s462_s24  ;;  %p1018_p0 = scmp.ne.s32.totalorder %s1011_s25, 0 }
  0x68   : > { %553 = vrcp.f32 %v229_v3  ;;  %v252_v16 = vrot.slane %v453_v9, 1  ;;  %v254_v17 = vrot.slane %v453_v9, 7  ;;  %v226_v21 = vsub.f32 1.0, %v225_v2  ;;  %s324_s7 = sadd.s32 %s705_s12, %s463_s18  ;;  %s327_s22 = sshll.u32 %s219_s6, 4  ;;  %s938_s22 = int_to_ptr.vmem [resolvable:$true] %s327_s22 }
  0x69   : > { %vm240_vm0 = vcmp.lt.s32.totalorder %v221_v1, 7  ;;  %vm245_vm1 = vcmp.ge.s32.totalorder %v221_v1, 1  ;;  %vm276_vm2 = vcmp.lt.s32.totalorder %v221_v1, 6  ;;  %vm281_vm3 = vcmp.ge.s32.totalorder %v221_v1, 2  ;;  %s459_s26 = sshll.u32 %s324_s7, 7  ;;  %s619_s4 = scalar_lea.vmem %s938_s22, 768 }
  0x6a   : > { %v259_v7 = vsel %vm240_vm0, %v258_v4, 0.0  ;;  %v261_v8 = vsel %vm245_vm1, %v260_v5, 0.0  ;;  %v295_v18 = vsel %vm276_vm2, %v294_v12, 0.0  ;;  %v297_v20 = vsel %vm281_vm3, %v296_v15, 0.0  ;;  %s943_s27 = scalar_lea.hbm %s999_s2, %s459_s26  ;;  %p620_p8 = scmp.ne.s32.totalorder %s938_s22, %s619_s4 }
  0x6b   : > { %v262_v10 = vadd.f32 %v261_v8, %v259_v7  ;;  %v244_v22 = vsel %vm240_vm0, %v241_v11, 0.0  ;;  %v277_v23 = vrot.slane %v222_v6, 2  ;;  %v298_v24 = vadd.f32 %v297_v20, %v295_v18  ;;  %s728_s0 = smov [#allocation7]  }
  0x6c   : > { %v249_v25 = vsel %vm245_vm1, %v246_v13, 0.0  ;;  %v282_v26 = vrot.slane %v222_v6, 6  ;;  %v288_v27 = vrot.slane %v453_v9, 2  ;;  %v253_v28 = vsel %vm240_vm0, %v252_v16, 0.0  ;;  %p621_p5 = pnand %p620_p8, %p1018_p0  ;;  %s623_s19 = sshll.u32 %s728_s0, 4  ;;  %s624_s19 = int_to_ptr.vmem [resolvable:$false] %s623_s19 }
  0x6d   : > { %v263_v14 = vadd.f32 %v262_v10, %v225_v2  ;;  %v255_v29 = vsel %vm245_vm1, %v254_v17, 0.0  ;;  %v290_v31 = vrot.slane %v453_v9, 6  ;;  %v227_v33 = vmul.f32 %v225_v2, %v222_v6  ;;  %s625_s20 = scalar_lea.vmem %s624_s19, 1536  ;;  %p626_p6 = scmp.lt.s32.totalorder %s938_s22, %s624_s19 }
  0x6e   : > { %v228_v34 = vmul.f32 %v453_v9, %v225_v2  ;;  %v250_v37 = vadd.f32 %v249_v25, %v244_v22  ;;  %v256_v39 = vadd.f32 %v255_v29, %v253_v28  ;;  %v280_v40 = vsel %vm276_vm2, %v277_v23, 0.0  ;;  %p622_p13 = pneg %p621_p5  ;;  %p627_p7 = scmp.lt.s32.totalorder %s625_s20, %s619_s4 }
  0x6f   : > { %v264_v19 = vmax.f32 %v263_v14, 1.0  ;;  %v299_v30 = vadd.f32 %v298_v24, %v263_v14  ;;  %v285_v41 = vsel %vm281_vm3, %v282_v26, 0.0  ;;  %v289_v42 = vsel %vm276_vm2, %v288_v27, 0.0 }
  0x70   : > { %v291_v45 = vsel %vm281_vm3, %v290_v31, 0.0  ;;  %v251_v48 = vadd.f32 %v250_v37, %v222_v6  ;;  %v257_v49 = vadd.f32 %v453_v9, %v256_v39  ;;  %v286_v50 = vadd.f32 %v285_v41, %v280_v40  ;;  %p628_p9 = por %p627_p7, %p626_p6 }
  0x71   : > { %555 = vrcp.f32 %v264_v19  ;;  %v300_v38 = vmax.f32 %v299_v30, 1.0  ;;  %v292_v51 = vadd.f32 %v291_v45, %v289_v42 }
  0x72   : > { %v554_v32 = vpop.eup %553  ;;  %v287_v55 = vadd.f32 %v286_v50, %v251_v48  ;;  %p629_p12 = pnand %p628_p9, %p622_p13 }
  0x73   : > { %v231_v35 = vmul.f32 %v554_v32, %v222_v6  ;;  %v235_v36 = vmul.f32 %v554_v32, %v453_v9  ;;  %557 = vrcp.f32 %v300_v38  ;;  %v293_v56 = vadd.f32 %v292_v51, %v257_v49 }
  0x75   : > { %v232_v43 = vmul.f32 %v231_v35, %v226_v21  ;;  %v236_v44 = vmul.f32 %v235_v36, %v226_v21 }
  0x77   : > { %v233_v46 = vadd.f32 %v232_v43, %v227_v33  ;;  %v237_v47 = vadd.f32 %v236_v44, %v228_v34 }
  0x79   : > { %234 = vst [vmem:[%s219_s6] sm:$0xff] %v233_v46  ;;  %454 = vst [vmem:[%s219_s6 + $0x8] sm:$0xff] %v237_v47 }
  0x7b   : > { %v556_v52 = vpop.eup %555 }
  0x7c   : > { %v266_v53 = vmul.f32 %v556_v52, %v251_v48  ;;  %v271_v54 = vmul.f32 %v556_v52, %v257_v49 }
  0x7d   : > { %v558_v59 = vpop.eup %557 }
  0x7e   : > { %v267_v57 = vmul.f32 %v266_v53, %v226_v21  ;;  %v272_v58 = vmul.f32 %v271_v54, %v226_v21  ;;  %v302_v62 = vmul.f32 %v558_v59, %v287_v55  ;;  %v307_v63 = vmul.f32 %v558_v59, %v293_v56 }
  0x80   : > { %v268_v60 = vadd.f32 %v267_v57, %v227_v33  ;;  %v273_v61 = vadd.f32 %v272_v58, %v228_v34  ;;  %v303_v0 = vmul.f32 %v302_v62, %v226_v21  ;;  %v308_v1 = vmul.f32 %v307_v63, %v226_v21 }
  0x82   : > { %455 = vst [vmem:[%s219_s6 + $0x10] sm:$0xff] %v268_v60  ;;  %456 = vst [vmem:[%s219_s6 + $0x18] sm:$0xff] %v273_v61  ;;  %v304_v2 = vadd.f32 %v303_v0, %v227_v33  ;;  %v309_v3 = vadd.f32 %v308_v1, %v228_v34 }
  0x84   : > { %457 = vst [vmem:[%s219_s6 + $0x20] sm:$0xff] %v304_v2  ;;  %458 = vst [vmem:[%s219_s6 + $0x28] sm:$0xff] %v309_v3 }
  0x85   : > { %632 = shalt.err (!%p629_p12)
}
  0x86   : > { %s633_s29 = scalar_lea.hbm %s943_s27, 768  ;;  %s637_s23 = scalar_lea.hbm %s999_s2, 3072 }
  0x87   : > { %p634_p10 = scmp.ne.s32.totalorder %s943_s27, %s633_s29  ;;  %p638_p4 = scmp.lt.u32.totalorder %s943_s27, %s999_s2 }
  0x88   : > { %p639_p3 = scmp.lt.u32.totalorder %s637_s23, %s633_s29  ;;  %p641_p8 = scmp.lt.u32.totalorder %s633_s29, %s943_s27 }
  0x89   : > { %p635_p11 = pnand %p634_p10, %p1018_p0 }
  0x8a   : > { %p640_p2 = por %p639_p3, %p638_p4 }
  0x8b   : > { %p636_p1 = pneg %p635_p11 }
  0x8c   : > { %p642_p5 = por %p641_p8, %p640_p2 }
  0x8e   : > { %p643_p13 = pnand %p642_p5, %p636_p1 }
  0x90   : > { %646 = shalt.err (!%p643_p13)
}
  0x91   : > { %s729_s21 = smov 128   ;;  %s730_s24 = smov 256  }
  0x92   : > { %s731_s6 = smov 8  }
  0x93   : > { %468 = dma.vmem_to_hbm [thread:$0]  (%p1018_p0), %s938_s22, 768, %s943_s27, %s313_s3, %s729_s21, %s730_s24, %s731_s6  }
  0x94 PF: > { %p482_p6 = scmp.ge.s32.totalorder %s721_s16, 2  ;;  %s342_s18 = sand.u32 1, %s693_s9  }
  0x95   : > { %p1019_p7 = scmp.ne.s32.totalorder %s1012_s28, 0  ;;  %s343_s7 = scalar_lea.sflag [#allocation4], %s342_s18 }
  0x97   : > { %p478_p9 = pnand %p482_p6, %p1019_p7 }
  0x99   : > { %688 = dma.done.wait (!%p478_p9), %s343_s7, 768  }
  0x9a   : > { %690 = vsyncadd (!%p478_p9), %s343_s7, 4294966528  ;;  %s21_s16 = sadd.s32 1, %s721_s16   ;;  %s1020_s26 = sld [smem:[#allocation11_spill]] }
  0x9b   : > { %p18_p12 = scmp.ge.s32.totalorder %s21_s16, 6   ;;  %s1021_s11 = sld [smem:[#allocation14_spill]] }
  0x9c   : > { %s1022_s25 = sld [smem:[#allocation12_spill]]  ;;  %s1023_s5 = sld [smem:[#allocation13_spill]] }
  0x9d   : > { %s1024_s9 = smov %s697_s10  ;;  %s1026_s12 = smov %s713_s14 }
  0x9e   : > { %s1027_s13 = smov %s717_s15  ;;  %20 = sbr.rel (!%p18_p12) target bundleno = 11 (0xb), region = 92 }
  0xa0   : > { %s1025_s10 = smov %s1020_s26 }
  0xa2   : > { %s1028_s14 = smov %s1022_s25  ;;  %s1029_s15 = smov %s1023_s5 }
  0xa5   :  { %348 = vsyncpa [#allocation3], 1 }
  0xa6   :  { %350 = vsyncpa [#allocation3 + $0x1], 1 }
  0xa7   :  { %351 = vsyncpa [#allocation6], 1 }
  0xa8   :  { %353 = vsyncpa [#allocation6 + $0x1], 1 }
  0xa9   :  { %354 = vsyncpa [#allocation4], 1 }
  0xaa   :  { %356 = vsyncpa [#allocation4 + $0x1], 1 }

</bundles_post_ra>
